<compile_context>
chip_gen: v6e
topology: v6e:2x2x1
jax: 0.10.0
libtpu: 0.0.40
codegen_flags: <defaults>
</compile_context>

<pallas_src>
import functools

import jax
import jax.numpy as jnp
from jax import lax
from jax.experimental import pallas as pl
from jax.experimental.pallas import tpu as pltpu


def _round_up(n: int, m: int) -> int:
    return ((n + m - 1) // m) * m


def rnn_kernel(x_ref, wxh_ref, whh_ref, bias_ref, hseq_ref, *, unroll):
    """One batch-chunk of the vanilla-RNN forward (full-T recurrence).

    x_ref:    (T, Bc, Ip)  time-major padded inputs for this batch chunk
    wxh_ref:  (Ip, Hp)     W_xh^T  (pre-transposed)
    whh_ref:  (Hp, Hp)     W_hh^T  (pre-transposed)
    bias_ref: (1, Hp)      b_xh + b_hh (folded, f32)
    hseq_ref: (T, Bc, Hp)  output hidden sequence; also used to stage the hoisted
                           input projection (no separate scratch buffer).
    """
    T, Bc, Ip = x_ref.shape
    Hp = hseq_ref.shape[-1]

    # Hoisted, time-parallel input projection: ONE (T*Bc, Ip) @ (Ip, Hp) MXU
    # matmul, staged straight into hseq_ref.  The reshapes are tile-aligned
    # (Bc % 8 == 0, Ip % 128 == 0, Hp % 128 == 0) so they are layout no-ops.
    proj = (
        jnp.dot(x_ref[...].reshape(T * Bc, Ip), wxh_ref[...],
                preferred_element_type=jnp.float32)
        + bias_ref[...]
    )
    hseq_ref[...] = proj.reshape(T, Bc, Hp).astype(hseq_ref.dtype)

    def step(t, h_prev):
        # Keep W_hh as a VMEM read inside the loop (not a hoisted value) so a
        # large (Hp, Hp) operand doesn't create vreg pressure when unrolled; the
        # MXU streams it from VMEM each step.
        rec = jnp.dot(h_prev.astype(whh_ref.dtype), whh_ref[...],
                      preferred_element_type=jnp.float32)
        h_new = jnp.tanh(hseq_ref[t].astype(jnp.float32) + rec)
        hseq_ref[t] = h_new.astype(hseq_ref.dtype)
        return h_new                          # hidden state carried in vregs (f32)

    h0 = jnp.zeros((Bc, Hp), jnp.float32)     # matches torch.zeros h0 init
    lax.fori_loop(0, T, step, h0, unroll=unroll)


def neural_rnn_forward(x, w_xh, b_xh, w_hh, b_hh):
    """x: (B, T, I). PyTorch nn.Linear layout: w_* is (out, in), b_* is (out,).

    Returns (h_seq (B, T, H), h (1, B, H)) matching NeuralRNN.forward
    (tanh nonlinearity, recurrence=True, h0 = zeros).
    """
    B, T, I = x.shape
    H = w_hh.shape[0]
    cdt = x.dtype                              # matmul operand / output dtype
    itemsize = jnp.dtype(cdt).itemsize
    sublane = 8 if itemsize >= 4 else 16       # full sublane tile (f32 vs bf16/fp16)

    Ip = _round_up(I, 128)                     # lane-dense input features
    Hp = _round_up(H, 128)                     # lane-dense hidden features

    # Batch chunk size: keep one chunk's streamed buffers (double-buffered x and
    # h_seq slabs + the f32 projection temp) around ~6 MiB.
    per_row = T * (Ip + Hp) * itemsize * 2 + T * Hp * 4
    Bc = (6 * 1024 * 1024) // max(per_row, 1)
    Bc = max(sublane, min((Bc // sublane) * sublane, _round_up(B, sublane)))
    Bp = _round_up(B, Bc)                      # padded batch, multiple of Bc
    n_chunks = Bp // Bc

    # Time-major + zero-pad (zero rows/cols contribute nothing => exact).
    # TODO(synk): fold this transpose/pad into the producer (or accept time-major
    # input) to drop an extra HBM pass at large T*B*I.
    x_tm = jnp.transpose(x, (1, 0, 2))
    x_tm = jnp.pad(x_tm, ((0, 0), (0, Bp - B), (0, Ip - I)))

    wxh_t = jnp.pad(jnp.transpose(w_xh).astype(cdt), ((0, Ip - I), (0, Hp - H)))
    whh_t = jnp.pad(jnp.transpose(w_hh).astype(cdt), ((0, Hp - H), (0, Hp - H)))
    bias = jnp.pad((b_xh + b_hh).astype(jnp.float32), (0, Hp - H)).reshape(1, Hp)

    # VMEM budget: weights + bias + double-buffered x/h_seq chunks + f32 proj temp.
    total_bytes = (
        (Ip * Hp + Hp * Hp) * itemsize + Hp * 4
        + 2 * T * Bc * (Ip + Hp) * itemsize
        + T * Bc * Hp * 4
    )
    vmem_limit = min(max(int(total_bytes * 1.5) + (2 << 20), 32 << 20), 100 << 20)

    hseq_tm = pl.pallas_call(
        functools.partial(rnn_kernel, unroll=min(T, 8)),
        out_shape=jax.ShapeDtypeStruct((T, Bp, Hp), cdt),
        grid=(n_chunks,),
        in_specs=[
            pl.BlockSpec((T, Bc, Ip), lambda b: (0, b, 0)),   # streamed per chunk
            pl.BlockSpec((Ip, Hp), lambda b: (0, 0)),         # resident weights
            pl.BlockSpec((Hp, Hp), lambda b: (0, 0)),
            pl.BlockSpec((1, Hp), lambda b: (0, 0)),
        ],
        out_specs=pl.BlockSpec((T, Bc, Hp), lambda b: (0, b, 0)),
        compiler_params=pltpu.CompilerParams(
            dimension_semantics=("parallel",),   # 2-TC batch split on v7x
            vmem_limit_bytes=vmem_limit,
        ),
    )(x_tm, wxh_t, whh_t, bias)

    h_seq = jnp.transpose(hseq_tm[:, :B, :H], (1, 0, 2))   # (B, T, H)
    h = h_seq[:, -1, :][jnp.newaxis]                        # (1, B, H) final hidden
    return h_seq, h


def _reference(x, w_xh, b_xh, w_hh, b_hh):
    """Pure-JAX reference mirroring the PyTorch loop."""
    B, T, I = x.shape
    H = w_hh.shape[0]
    h = jnp.zeros((B, H), x.dtype)
    hs = []
    for t in range(T):
        h = jnp.tanh(h @ w_hh.T + b_hh + x[:, t, :] @ w_xh.T + b_xh)
        hs.append(h)
    h_seq = jnp.stack(hs, axis=1)               # (B, T, H)
    return h_seq, h[None, :, :]


if __name__ == "__main__":
    B, T, I, H = 2, 8, 15, 15
    key = jax.random.PRNGKey(0)
    kx, k1, k2, k3, k4 = jax.random.split(key, 5)

    x = jax.random.normal(kx, (B, T, I), dtype=jnp.float32)

    # Deterministic init, PyTorch Linear-style shapes: weight (out, in), bias (out,)
    bound_x = 1.0 / jnp.sqrt(I)
    bound_h = 1.0 / jnp.sqrt(H)
    w_xh = jax.random.uniform(k1, (H, I), jnp.float32, -bound_x, bound_x)
    b_xh = jax.random.uniform(k2, (H,), jnp.float32, -bound_x, bound_x)
    w_hh = jax.random.uniform(k3, (H, H), jnp.float32, -bound_h, bound_h)
    b_hh = jax.random.uniform(k4, (H,), jnp.float32, -bound_h, bound_h)

    fwd = jax.jit(neural_rnn_forward)
    h_seq, h = fwd(x, w_xh, b_xh, w_hh, b_hh)
    jax.block_until_ready((h_seq, h))

    h_seq_ref, h_ref = _reference(x, w_xh, b_xh, w_hh, b_hh)
    assert h_seq.shape == (B, T, H) and h.shape == (1, B, H)
    assert jnp.allclose(h_seq, h_seq_ref, atol=1e-5, rtol=1e-5)
    assert jnp.allclose(h, h_ref, atol=1e-5, rtol=1e-5)

    print("KERNEL_OK")
</pallas_src>

<mosaic_0001>
module attributes {stable_mosaic.version = 11 : i64} {
  func.func @rnn_kernel(%arg0: i32, %arg1: memref<8x8x128xf32, #tpu.memory_space<vmem>>, %arg2: memref<128x128xf32, #tpu.memory_space<vmem>>, %arg3: memref<128x128xf32, #tpu.memory_space<vmem>>, %arg4: memref<1x128xf32, #tpu.memory_space<vmem>>, %arg5: memref<8x8x128xf32, #tpu.memory_space<vmem>>) attributes {dimension_semantics = [#tpu.dimension_semantics<parallel>], iteration_bounds = array<i64: 1>, scalar_prefetch = 0 : i64, scratch_operands = 0 : i64, tpu.core_type = #tpu.core_type<tc>, window_params = [{transform_indices = @transform_0, window_bounds = array<i64: 8, 8, 128>}, {pipeline_mode = #tpu.pipeline_mode<synchronous>, transform_indices = @transform_1, window_bounds = array<i64: 128, 128>}, {pipeline_mode = #tpu.pipeline_mode<synchronous>, transform_indices = @transform_2, window_bounds = array<i64: 128, 128>}, {pipeline_mode = #tpu.pipeline_mode<synchronous>, transform_indices = @transform_3, window_bounds = array<i64: 1, 128>}, {transform_indices = @transform_4, window_bounds = array<i64: 8, 8, 128>}]} {
    %c0 = arith.constant 0 : index
    %c0_0 = arith.constant 0 : index
    %c0_1 = arith.constant 0 : index
    %0 = vector.load %arg1[%c0, %c0_0, %c0_1] : memref<8x8x128xf32, #tpu.memory_space<vmem>>, vector<8x8x128xf32>
    %1 = vector.shape_cast %0 : vector<8x8x128xf32> to vector<64x128xf32>
    %c0_2 = arith.constant 0 : index
    %c0_3 = arith.constant 0 : index
    %2 = vector.load %arg2[%c0_2, %c0_3] : memref<128x128xf32, #tpu.memory_space<vmem>>, vector<128x128xf32>
    %cst = arith.constant dense<0.000000e+00> : vector<64x128xf32>
    %3 = tpu.matmul %1, %2, %cst {dimension_numbers = #tpu.dot_dimension_numbers<[1], [0], [0], [1], [0, 0, 1, 1], [], []>} : vector<64x128xf32>, vector<128x128xf32>, vector<64x128xf32> -> vector<64x128xf32>
    %c0_4 = arith.constant 0 : index
    %c0_5 = arith.constant 0 : index
    %4 = vector.load %arg4[%c0_4, %c0_5] : memref<1x128xf32, #tpu.memory_space<vmem>>, vector<1x128xf32>
    %5 = vector.broadcast %4 : vector<1x128xf32> to vector<64x128xf32>
    %6 = arith.addf %3, %5 : vector<64x128xf32>
    %7 = vector.shape_cast %6 : vector<64x128xf32> to vector<8x8x128xf32>
    %c0_6 = arith.constant 0 : index
    %c0_7 = arith.constant 0 : index
    %c0_8 = arith.constant 0 : index
    %8 = vector.load %arg5[%c0_6, %c0_7, %c0_8] : memref<8x8x128xf32, #tpu.memory_space<vmem>>, vector<8x8x128xf32>
    tpu.vector_store %arg5[%c0_6, %c0_7, %c0_8], %7 {strides = array<i32>} : memref<8x8x128xf32, #tpu.memory_space<vmem>>, vector<8x8x128xf32>,
    %cst_9 = arith.constant 0.000000e+00 : f32
    %9 = vector.broadcast %cst_9 : f32 to vector<8x128xf32>
    %c0_i32 = arith.constant 0 : i32
    %c0_10 = arith.constant 0 : index
    %c0_11 = arith.constant 0 : index
    %10 = vector.load %arg3[%c0_10, %c0_11] : memref<128x128xf32, #tpu.memory_space<vmem>>, vector<128x128xf32>
    %cst_12 = arith.constant dense<0.000000e+00> : vector<8x128xf32>
    %11 = tpu.matmul %9, %10, %cst_12 {dimension_numbers = #tpu.dot_dimension_numbers<[1], [0], [0], [1], [0, 0, 1, 1], [], []>} : vector<8x128xf32>, vector<128x128xf32>, vector<8x128xf32> -> vector<8x128xf32>
    %12 = arith.index_cast %c0_i32 : i32 to index
    %c0_13 = arith.constant 0 : index
    %c0_14 = arith.constant 0 : index
    %13 = vector.load %arg5[%12, %c0_13, %c0_14] : memref<8x8x128xf32, #tpu.memory_space<vmem>>, vector<1x8x128xf32>
    %14 = vector.shape_cast %13 : vector<1x8x128xf32> to vector<8x128xf32>
    %15 = arith.addf %14, %11 : vector<8x128xf32>
    %16 = math.tanh %15 : vector<8x128xf32>
    %17 = arith.index_cast %c0_i32 : i32 to index
    %c0_15 = arith.constant 0 : index
    %c0_16 = arith.constant 0 : index
    %18 = vector.load %arg5[%17, %c0_15, %c0_16] : memref<8x8x128xf32, #tpu.memory_space<vmem>>, vector<1x8x128xf32>
    %19 = vector.shape_cast %18 : vector<1x8x128xf32> to vector<8x128xf32>
    %20 = vector.shape_cast %16 : vector<8x128xf32> to vector<1x8x128xf32>
    tpu.vector_store %arg5[%17, %c0_15, %c0_16], %20 {strides = array<i32>} : memref<8x8x128xf32, #tpu.memory_space<vmem>>, vector<1x8x128xf32>,
    %c1_i32 = arith.constant 1 : i32
    %c0_17 = arith.constant 0 : index
    %c0_18 = arith.constant 0 : index
    %21 = vector.load %arg3[%c0_17, %c0_18] : memref<128x128xf32, #tpu.memory_space<vmem>>, vector<128x128xf32>
    %cst_19 = arith.constant dense<0.000000e+00> : vector<8x128xf32>
    %22 = tpu.matmul %16, %21, %cst_19 {dimension_numbers = #tpu.dot_dimension_numbers<[1], [0], [0], [1], [0, 0, 1, 1], [], []>} : vector<8x128xf32>, vector<128x128xf32>, vector<8x128xf32> -> vector<8x128xf32>
    %23 = arith.index_cast %c1_i32 : i32 to index
    %c0_20 = arith.constant 0 : index
    %c0_21 = arith.constant 0 : index
    %24 = vector.load %arg5[%23, %c0_20, %c0_21] : memref<8x8x128xf32, #tpu.memory_space<vmem>>, vector<1x8x128xf32>
    %25 = vector.shape_cast %24 : vector<1x8x128xf32> to vector<8x128xf32>
    %26 = arith.addf %25, %22 : vector<8x128xf32>
    %27 = math.tanh %26 : vector<8x128xf32>
    %28 = arith.index_cast %c1_i32 : i32 to index
    %c0_22 = arith.constant 0 : index
    %c0_23 = arith.constant 0 : index
    %29 = vector.load %arg5[%28, %c0_22, %c0_23] : memref<8x8x128xf32, #tpu.memory_space<vmem>>, vector<1x8x128xf32>
    %30 = vector.shape_cast %29 : vector<1x8x128xf32> to vector<8x128xf32>
    %31 = vector.shape_cast %27 : vector<8x128xf32> to vector<1x8x128xf32>
    tpu.vector_store %arg5[%28, %c0_22, %c0_23], %31 {strides = array<i32>} : memref<8x8x128xf32, #tpu.memory_space<vmem>>, vector<1x8x128xf32>,
    %c2_i32 = arith.constant 2 : i32
    %c0_24 = arith.constant 0 : index
    %c0_25 = arith.constant 0 : index
    %32 = vector.load %arg3[%c0_24, %c0_25] : memref<128x128xf32, #tpu.memory_space<vmem>>, vector<128x128xf32>
    %cst_26 = arith.constant dense<0.000000e+00> : vector<8x128xf32>
    %33 = tpu.matmul %27, %32, %cst_26 {dimension_numbers = #tpu.dot_dimension_numbers<[1], [0], [0], [1], [0, 0, 1, 1], [], []>} : vector<8x128xf32>, vector<128x128xf32>, vector<8x128xf32> -> vector<8x128xf32>
    %34 = arith.index_cast %c2_i32 : i32 to index
    %c0_27 = arith.constant 0 : index
    %c0_28 = arith.constant 0 : index
    %35 = vector.load %arg5[%34, %c0_27, %c0_28] : memref<8x8x128xf32, #tpu.memory_space<vmem>>, vector<1x8x128xf32>
    %36 = vector.shape_cast %35 : vector<1x8x128xf32> to vector<8x128xf32>
    %37 = arith.addf %36, %33 : vector<8x128xf32>
    %38 = math.tanh %37 : vector<8x128xf32>
    %39 = arith.index_cast %c2_i32 : i32 to index
    %c0_29 = arith.constant 0 : index
    %c0_30 = arith.constant 0 : index
    %40 = vector.load %arg5[%39, %c0_29, %c0_30] : memref<8x8x128xf32, #tpu.memory_space<vmem>>, vector<1x8x128xf32>
    %41 = vector.shape_cast %40 : vector<1x8x128xf32> to vector<8x128xf32>
    %42 = vector.shape_cast %38 : vector<8x128xf32> to vector<1x8x128xf32>
    tpu.vector_store %arg5[%39, %c0_29, %c0_30], %42 {strides = array<i32>} : memref<8x8x128xf32, #tpu.memory_space<vmem>>, vector<1x8x128xf32>,
    %c3_i32 = arith.constant 3 : i32
    %c0_31 = arith.constant 0 : index
    %c0_32 = arith.constant 0 : index
    %43 = vector.load %arg3[%c0_31, %c0_32] : memref<128x128xf32, #tpu.memory_space<vmem>>, vector<128x128xf32>
    %cst_33 = arith.constant dense<0.000000e+00> : vector<8x128xf32>
    %44 = tpu.matmul %38, %43, %cst_33 {dimension_numbers = #tpu.dot_dimension_numbers<[1], [0], [0], [1], [0, 0, 1, 1], [], []>} : vector<8x128xf32>, vector<128x128xf32>, vector<8x128xf32> -> vector<8x128xf32>
    %45 = arith.index_cast %c3_i32 : i32 to index
    %c0_34 = arith.constant 0 : index
    %c0_35 = arith.constant 0 : index
    %46 = vector.load %arg5[%45, %c0_34, %c0_35] : memref<8x8x128xf32, #tpu.memory_space<vmem>>, vector<1x8x128xf32>
    %47 = vector.shape_cast %46 : vector<1x8x128xf32> to vector<8x128xf32>
    %48 = arith.addf %47, %44 : vector<8x128xf32>
    %49 = math.tanh %48 : vector<8x128xf32>
    %50 = arith.index_cast %c3_i32 : i32 to index
    %c0_36 = arith.constant 0 : index
    %c0_37 = arith.constant 0 : index
    %51 = vector.load %arg5[%50, %c0_36, %c0_37] : memref<8x8x128xf32, #tpu.memory_space<vmem>>, vector<1x8x128xf32>
    %52 = vector.shape_cast %51 : vector<1x8x128xf32> to vector<8x128xf32>
    %53 = vector.shape_cast %49 : vector<8x128xf32> to vector<1x8x128xf32>
    tpu.vector_store %arg5[%50, %c0_36, %c0_37], %53 {strides = array<i32>} : memref<8x8x128xf32, #tpu.memory_space<vmem>>, vector<1x8x128xf32>,
    %c4_i32 = arith.constant 4 : i32
    %c0_38 = arith.constant 0 : index
    %c0_39 = arith.constant 0 : index
    %54 = vector.load %arg3[%c0_38, %c0_39] : memref<128x128xf32, #tpu.memory_space<vmem>>, vector<128x128xf32>
    %cst_40 = arith.constant dense<0.000000e+00> : vector<8x128xf32>
    %55 = tpu.matmul %49, %54, %cst_40 {dimension_numbers = #tpu.dot_dimension_numbers<[1], [0], [0], [1], [0, 0, 1, 1], [], []>} : vector<8x128xf32>, vector<128x128xf32>, vector<8x128xf32> -> vector<8x128xf32>
    %56 = arith.index_cast %c4_i32 : i32 to index
    %c0_41 = arith.constant 0 : index
    %c0_42 = arith.constant 0 : index
    %57 = vector.load %arg5[%56, %c0_41, %c0_42] : memref<8x8x128xf32, #tpu.memory_space<vmem>>, vector<1x8x128xf32>
    %58 = vector.shape_cast %57 : vector<1x8x128xf32> to vector<8x128xf32>
    %59 = arith.addf %58, %55 : vector<8x128xf32>
    %60 = math.tanh %59 : vector<8x128xf32>
    %61 = arith.index_cast %c4_i32 : i32 to index
    %c0_43 = arith.constant 0 : index
    %c0_44 = arith.constant 0 : index
    %62 = vector.load %arg5[%61, %c0_43, %c0_44] : memref<8x8x128xf32, #tpu.memory_space<vmem>>, vector<1x8x128xf32>
    %63 = vector.shape_cast %62 : vector<1x8x128xf32> to vector<8x128xf32>
    %64 = vector.shape_cast %60 : vector<8x128xf32> to vector<1x8x128xf32>
    tpu.vector_store %arg5[%61, %c0_43, %c0_44], %64 {strides = array<i32>} : memref<8x8x128xf32, #tpu.memory_space<vmem>>, vector<1x8x128xf32>,
    %c5_i32 = arith.constant 5 : i32
    %c0_45 = arith.constant 0 : index
    %c0_46 = arith.constant 0 : index
    %65 = vector.load %arg3[%c0_45, %c0_46] : memref<128x128xf32, #tpu.memory_space<vmem>>, vector<128x128xf32>
    %cst_47 = arith.constant dense<0.000000e+00> : vector<8x128xf32>
    %66 = tpu.matmul %60, %65, %cst_47 {dimension_numbers = #tpu.dot_dimension_numbers<[1], [0], [0], [1], [0, 0, 1, 1], [], []>} : vector<8x128xf32>, vector<128x128xf32>, vector<8x128xf32> -> vector<8x128xf32>
    %67 = arith.index_cast %c5_i32 : i32 to index
    %c0_48 = arith.constant 0 : index
    %c0_49 = arith.constant 0 : index
    %68 = vector.load %arg5[%67, %c0_48, %c0_49] : memref<8x8x128xf32, #tpu.memory_space<vmem>>, vector<1x8x128xf32>
    %69 = vector.shape_cast %68 : vector<1x8x128xf32> to vector<8x128xf32>
    %70 = arith.addf %69, %66 : vector<8x128xf32>
    %71 = math.tanh %70 : vector<8x128xf32>
    %72 = arith.index_cast %c5_i32 : i32 to index
    %c0_50 = arith.constant 0 : index
    %c0_51 = arith.constant 0 : index
    %73 = vector.load %arg5[%72, %c0_50, %c0_51] : memref<8x8x128xf32, #tpu.memory_space<vmem>>, vector<1x8x128xf32>
    %74 = vector.shape_cast %73 : vector<1x8x128xf32> to vector<8x128xf32>
    %75 = vector.shape_cast %71 : vector<8x128xf32> to vector<1x8x128xf32>
    tpu.vector_store %arg5[%72, %c0_50, %c0_51], %75 {strides = array<i32>} : memref<8x8x128xf32, #tpu.memory_space<vmem>>, vector<1x8x128xf32>,
    %c6_i32 = arith.constant 6 : i32
    %c0_52 = arith.constant 0 : index
    %c0_53 = arith.constant 0 : index
    %76 = vector.load %arg3[%c0_52, %c0_53] : memref<128x128xf32, #tpu.memory_space<vmem>>, vector<128x128xf32>
    %cst_54 = arith.constant dense<0.000000e+00> : vector<8x128xf32>
    %77 = tpu.matmul %71, %76, %cst_54 {dimension_numbers = #tpu.dot_dimension_numbers<[1], [0], [0], [1], [0, 0, 1, 1], [], []>} : vector<8x128xf32>, vector<128x128xf32>, vector<8x128xf32> -> vector<8x128xf32>
    %78 = arith.index_cast %c6_i32 : i32 to index
    %c0_55 = arith.constant 0 : index
    %c0_56 = arith.constant 0 : index
    %79 = vector.load %arg5[%78, %c0_55, %c0_56] : memref<8x8x128xf32, #tpu.memory_space<vmem>>, vector<1x8x128xf32>
    %80 = vector.shape_cast %79 : vector<1x8x128xf32> to vector<8x128xf32>
    %81 = arith.addf %80, %77 : vector<8x128xf32>
    %82 = math.tanh %81 : vector<8x128xf32>
    %83 = arith.index_cast %c6_i32 : i32 to index
    %c0_57 = arith.constant 0 : index
    %c0_58 = arith.constant 0 : index
    %84 = vector.load %arg5[%83, %c0_57, %c0_58] : memref<8x8x128xf32, #tpu.memory_space<vmem>>, vector<1x8x128xf32>
    %85 = vector.shape_cast %84 : vector<1x8x128xf32> to vector<8x128xf32>
    %86 = vector.shape_cast %82 : vector<8x128xf32> to vector<1x8x128xf32>
    tpu.vector_store %arg5[%83, %c0_57, %c0_58], %86 {strides = array<i32>} : memref<8x8x128xf32, #tpu.memory_space<vmem>>, vector<1x8x128xf32>,
    %c7_i32 = arith.constant 7 : i32
    %c0_59 = arith.constant 0 : index
    %c0_60 = arith.constant 0 : index
    %87 = vector.load %arg3[%c0_59, %c0_60] : memref<128x128xf32, #tpu.memory_space<vmem>>, vector<128x128xf32>
    %cst_61 = arith.constant dense<0.000000e+00> : vector<8x128xf32>
    %88 = tpu.matmul %82, %87, %cst_61 {dimension_numbers = #tpu.dot_dimension_numbers<[1], [0], [0], [1], [0, 0, 1, 1], [], []>} : vector<8x128xf32>, vector<128x128xf32>, vector<8x128xf32> -> vector<8x128xf32>
    %89 = arith.index_cast %c7_i32 : i32 to index
    %c0_62 = arith.constant 0 : index
    %c0_63 = arith.constant 0 : index
    %90 = vector.load %arg5[%89, %c0_62, %c0_63] : memref<8x8x128xf32, #tpu.memory_space<vmem>>, vector<1x8x128xf32>
    %91 = vector.shape_cast %90 : vector<1x8x128xf32> to vector<8x128xf32>
    %92 = arith.addf %91, %88 : vector<8x128xf32>
    %93 = math.tanh %92 : vector<8x128xf32>
    %94 = arith.index_cast %c7_i32 : i32 to index
    %c0_64 = arith.constant 0 : index
    %c0_65 = arith.constant 0 : index
    %95 = vector.load %arg5[%94, %c0_64, %c0_65] : memref<8x8x128xf32, #tpu.memory_space<vmem>>, vector<1x8x128xf32>
    %96 = vector.shape_cast %95 : vector<1x8x128xf32> to vector<8x128xf32>
    %97 = vector.shape_cast %93 : vector<8x128xf32> to vector<1x8x128xf32>
    tpu.vector_store %arg5[%94, %c0_64, %c0_65], %97 {strides = array<i32>} : memref<8x8x128xf32, #tpu.memory_space<vmem>>, vector<1x8x128xf32>,
    %c8_i32 = arith.constant 8 : i32
    return
  }
  func.func @transform_0(%arg0: i32) -> (i32, i32, i32) {
    %c0_i32 = arith.constant 0 : i32
    %c0_i32_0 = arith.constant 0 : i32
    %c0_i32_1 = arith.constant 0 : i32
    return %c0_i32, %arg0, %c0_i32_0 : i32, i32, i32
  }
  func.func @transform_1(%arg0: i32) -> (i32, i32) {
    %c0_i32 = arith.constant 0 : i32
    %c0_i32_0 = arith.constant 0 : i32
    %c0_i32_1 = arith.constant 0 : i32
    return %c0_i32, %c0_i32_0 : i32, i32
  }
  func.func @transform_2(%arg0: i32) -> (i32, i32) {
    %c0_i32 = arith.constant 0 : i32
    %c0_i32_0 = arith.constant 0 : i32
    %c0_i32_1 = arith.constant 0 : i32
    return %c0_i32, %c0_i32_0 : i32, i32
  }
  func.func @transform_3(%arg0: i32) -> (i32, i32) {
    %c0_i32 = arith.constant 0 : i32
    %c0_i32_0 = arith.constant 0 : i32
    %c0_i32_1 = arith.constant 0 : i32
    return %c0_i32, %c0_i32_0 : i32, i32
  }
  func.func @transform_4(%arg0: i32) -> (i32, i32, i32) {
    %c0_i32 = arith.constant 0 : i32
    %c0_i32_0 = arith.constant 0 : i32
    %c0_i32_1 = arith.constant 0 : i32
    return %c0_i32, %arg0, %c0_i32_0 : i32, i32, i32
  }
}

</mosaic_0001>

<bundles_post_ra>
// kernel: neural_rnn_forward.1
= control target key start
LH: loop header
LB: loop body
LE: loop exit
PB: predicated region body
PF: predicated region fallthrough
CT: control target
= control target key end

     0   :  { %v1409_v2 = vmov 0.0   ;;  %vm1410_vm0 = vmmov 0   ;;  %s1913_s1 = inlined_call_operand.vmem [shape: f32[128,128], index: 1, kind: input, shape index: {}]   ;;  %s1914_s2 = inlined_call_operand.vmem [shape: f32[128,128], index: 2, kind: input, shape index: {}]   ;;  %s1915_s0 = inlined_call_operand.vmem [shape: f32[8,8,128], index: 0, kind: input, shape index: {}]   ;;  %s1916_s3 = inlined_call_operand.vmem [shape: f32[1,128], index: 3, kind: input, shape index: {}]   ;;  %s1917_s4 = inlined_call_operand.vmem [shape: f32[8,8,128], index: 4, kind: output, shape index: {}]  }
   0x1   :  { %v40_v0 = vld [vmem:[%s1913_s1 + $0x78] sm:$0xff]  ;;  %v39_v1 = vld [vmem:[%s1913_s1 + $0x70] sm:$0xff]  ;;  %1111 = vmatprep.subr.mxu1 %v1409_v2  ;;  %1143 = vmatprep.mubr.msk.f32.mxu1 %vm1410_vm0, %v1409_v2  ;;  %v38_v3 = vld [vmem:[%s1913_s1 + $0x68] sm:$0xff] }
   0x2   :  { %1067 = vmatprep.subr.mxu0 %v40_v0  ;;  %v1451_v4 = vld [vmem:[%s1914_s2 + $0x78] sm:$0xff]  ;;  %v1456_v5 = vld [vmem:[%s1914_s2 + $0x70] sm:$0xff]  ;;  %v37_v6 = vld [vmem:[%s1913_s1 + $0x60] sm:$0xff] }
   0x3   :  { %1068 = vmatpush3.msra.mxu0 %v40_v0  ;;  %1112 = vmatpush3.msra.mxu1 %v1451_v4  ;;  %v1466_v7 = vld [vmem:[%s1914_s2 + $0x68] sm:$0xff]  ;;  %v36_v8 = vld [vmem:[%s1913_s1 + $0x58] sm:$0xff]  ;;  %v1476_v9 = vld [vmem:[%s1914_s2 + $0x60] sm:$0xff] }
   0x4   :  { %1069 = vmatprep.subr.mxu0 %v39_v1  ;;  %1113 = vmatprep.subr.mxu1 %v1409_v2  ;;  %v35_v10 = vld [vmem:[%s1913_s1 + $0x50] sm:$0xff]  ;;  %v1486_v11 = vld [vmem:[%s1914_s2 + $0x58] sm:$0xff]  ;;  %v34_v12 = vld [vmem:[%s1913_s1 + $0x48] sm:$0xff] }
   0x5   :  { %1070 = vmatpush3.msra.mxu0 %v39_v1  ;;  %1114 = vmatpush3.msra.mxu1 %v1456_v5  ;;  %v1496_v13 = vld [vmem:[%s1914_s2 + $0x50] sm:$0xff]  ;;  %v33_v14 = vld [vmem:[%s1913_s1 + $0x40] sm:$0xff]  ;;  %v1506_v15 = vld [vmem:[%s1914_s2 + $0x48] sm:$0xff] }
   0x6   :  { %1071 = vmatprep.subr.mxu0 %v38_v3  ;;  %1115 = vmatprep.subr.mxu1 %v1409_v2  ;;  %v32_v16 = vld [vmem:[%s1913_s1 + $0x38] sm:$0xff]  ;;  %v1516_v17 = vld [vmem:[%s1914_s2 + $0x40] sm:$0xff]  ;;  %v31_v18 = vld [vmem:[%s1913_s1 + $0x30] sm:$0xff] }
   0x7   :  { %1072 = vmatpush3.msra.mxu0 %v38_v3  ;;  %1116 = vmatpush3.msra.mxu1 %v1466_v7  ;;  %v1526_v19 = vld [vmem:[%s1914_s2 + $0x38] sm:$0xff]  ;;  %v30_v20 = vld [vmem:[%s1913_s1 + $0x28] sm:$0xff]  ;;  %v1536_v21 = vld [vmem:[%s1914_s2 + $0x30] sm:$0xff] }
   0x8   :  { %1073 = vmatprep.subr.mxu0 %v37_v6  ;;  %1117 = vmatprep.subr.mxu1 %v1409_v2  ;;  %v29_v22 = vld [vmem:[%s1913_s1 + $0x20] sm:$0xff]  ;;  %v1550_v24 = vld [vmem:[%s1914_s2 + $0x28] sm:$0xff]  ;;  %v28_v25 = vld [vmem:[%s1913_s1 + $0x18] sm:$0xff] }
   0x9   :  { %1074 = vmatpush3.msra.mxu0 %v37_v6  ;;  %1118 = vmatpush3.msra.mxu1 %v1476_v9  ;;  %v17_v23 = vld [vmem:[%s1915_s0] sm:$0xff]  ;;  %v27_v27 = vld [vmem:[%s1913_s1 + $0x10] sm:$0xff]  ;;  %v1569_v28 = vld [vmem:[%s1914_s2 + $0x18] sm:$0xff] }
   0xa   :  { %1075 = vmatprep.subr.mxu0 %v36_v8  ;;  %1119 = vmatprep.subr.mxu1 %v1409_v2  ;;  %v1559_v26 = vld [vmem:[%s1914_s2 + $0x20] sm:$0xff]  ;;  %v26_v29 = vld [vmem:[%s1913_s1 + $0x8] sm:$0xff]  ;;  %v1579_v30 = vld [vmem:[%s1914_s2 + $0x10] sm:$0xff] }
   0xb   :  { %1076 = vmatpush3.msra.mxu0 %v36_v8  ;;  %1120 = vmatpush3.msra.mxu1 %v1486_v11  ;;  %v25_v31 = vld [vmem:[%s1913_s1] sm:$0xff]  ;;  %v1589_v32 = vld [vmem:[%s1914_s2 + $0x8] sm:$0xff]  ;;  %v19_v35 = vld [vmem:[%s1915_s0 + $0x10] sm:$0xff] }
   0xc   :  { %1077 = vmatprep.subr.mxu0 %v35_v10  ;;  %1121 = vmatprep.subr.mxu1 %v1409_v2  ;;  %v18_v33 = vld [vmem:[%s1915_s0 + $0x8] sm:$0xff]  ;;  %v1599_v34 = vld [vmem:[%s1914_s2] sm:$0xff]  ;;  %v20_v36 = vld [vmem:[%s1915_s0 + $0x18] sm:$0xff] }
   0xd   :  { %1078 = vmatpush3.msra.mxu0 %v35_v10  ;;  %1122 = vmatpush3.msra.mxu1 %v1496_v13  ;;  %v21_v37 = vld [vmem:[%s1915_s0 + $0x20] sm:$0xff]  ;;  %v22_v38 = vld [vmem:[%s1915_s0 + $0x28] sm:$0xff]  ;;  %v23_v39 = vld [vmem:[%s1915_s0 + $0x30] sm:$0xff] }
   0xe   :  { %1079 = vmatprep.subr.mxu0 %v34_v12  ;;  %1123 = vmatprep.subr.mxu1 %v1409_v2  ;;  %v24_v40 = vld [vmem:[%s1915_s0 + $0x38] sm:$0xff]  ;;  %v1696_v42 = vld [vmem:[%s1916_s3] ss:$0 sm:$0xff] }
   0xf   :  { %1080 = vmatpush3.msra.mxu0 %v34_v12  ;;  %1124 = vmatpush3.msra.mxu1 %v1506_v15 }
  0x10   :  { %1081 = vmatprep.subr.mxu0 %v33_v14  ;;  %1125 = vmatprep.subr.mxu1 %v1409_v2 }
  0x11   :  { %1082 = vmatpush3.msra.mxu0 %v33_v14  ;;  %1126 = vmatpush3.msra.mxu1 %v1516_v17 }
  0x12   :  { %1083 = vmatprep.subr.mxu0 %v32_v16  ;;  %1127 = vmatprep.subr.mxu1 %v1409_v2 }
  0x13   :  { %1084 = vmatpush3.msra.mxu0 %v32_v16  ;;  %1128 = vmatpush3.msra.mxu1 %v1526_v19 }
  0x14   :  { %1085 = vmatprep.subr.mxu0 %v31_v18  ;;  %1129 = vmatprep.subr.mxu1 %v1409_v2 }
  0x15   :  { %1086 = vmatpush3.msra.mxu0 %v31_v18  ;;  %1130 = vmatpush3.msra.mxu1 %v1536_v21 }
  0x16   :  { %1087 = vmatprep.subr.mxu0 %v30_v20  ;;  %1131 = vmatprep.subr.mxu1 %v1409_v2 }
  0x17   :  { %1088 = vmatpush3.msra.mxu0 %v30_v20  ;;  %1099 = vmatprep.mubr.f32.mxu0 %v17_v23 }
  0x18   :  { %1089 = vmatprep.subr.mxu0 %v29_v22  ;;  %1132 = vmatpush3.msra.mxu1 %v1550_v24 }
  0x19   :  { %1090 = vmatpush3.msra.mxu0 %v29_v22  ;;  %1133 = vmatprep.subr.mxu1 %v1409_v2 }
  0x1a   :  { %1091 = vmatprep.subr.mxu0 %v28_v25  ;;  %1134 = vmatpush3.msra.mxu1 %v1559_v26 }
  0x1b   :  { %1092 = vmatpush3.msra.mxu0 %v28_v25  ;;  %1135 = vmatprep.subr.mxu1 %v1409_v2 }
  0x1c   :  { %1093 = vmatprep.subr.mxu0 %v27_v27  ;;  %1136 = vmatpush3.msra.mxu1 %v1569_v28 }
  0x1d   :  { %1094 = vmatpush3.msra.mxu0 %v27_v27  ;;  %1137 = vmatprep.subr.mxu1 %v1409_v2 }
  0x1e   :  { %1095 = vmatprep.subr.mxu0 %v26_v29  ;;  %1138 = vmatpush3.msra.mxu1 %v1579_v30 }
  0x1f   :  { %1096 = vmatpush3.msra.mxu0 %v26_v29  ;;  %1139 = vmatprep.subr.mxu1 %v1409_v2 }
  0x20   :  { %1097 = vmatprep.subr.mxu0 %v25_v31  ;;  %1140 = vmatpush3.msra.mxu1 %v1589_v32 }
  0x21   :  { %1098 = vmatpush3.msra.mxu0 %v25_v31  ;;  %1141 = vmatprep.subr.mxu1 %v1409_v2 }
  0x22   :  { %1100 = vmatmul.mubr.f32.vlgmr.msra.gmra.mxu0 %v18_v33  ;;  %1142 = vmatpush3.msra.mxu1 %v1599_v34 }
  0x23   :  { %1146 = vmatprep.subr.mxu0 %v1409_v2  ;;  %1144 = vmatmul.mubr.f32.vlgmr.msra.gmra.mxu1 %v1409_v2 }
  0x24   :  { %1147 = vmatpush3.msra.mxu0 %v1451_v4  ;;  %1181 = vmatprep.subr.mxu1 %v1409_v2 }
  0x25   :  { %1148 = vmatprep.subr.mxu0 %v1409_v2  ;;  %1182 = vmatpush3.msra.mxu1 %v1451_v4 }
  0x26   :  { %1149 = vmatpush3.msra.mxu0 %v1456_v5  ;;  %1183 = vmatprep.subr.mxu1 %v1409_v2 }
  0x27   :  { %1150 = vmatprep.subr.mxu0 %v1409_v2  ;;  %1184 = vmatpush3.msra.mxu1 %v1456_v5 }
  0x28   :  { %1151 = vmatpush3.msra.mxu0 %v1466_v7  ;;  %1185 = vmatprep.subr.mxu1 %v1409_v2 }
  0x29   :  { %1152 = vmatprep.subr.mxu0 %v1409_v2  ;;  %1186 = vmatpush3.msra.mxu1 %v1466_v7 }
  0x2a   :  { %1153 = vmatpush3.msra.mxu0 %v1476_v9  ;;  %1187 = vmatprep.subr.mxu1 %v1409_v2 }
  0x2b   :  { %1154 = vmatprep.subr.mxu0 %v1409_v2  ;;  %1188 = vmatpush3.msra.mxu1 %v1476_v9 }
  0x2c   :  { %1155 = vmatpush3.msra.mxu0 %v1486_v11  ;;  %1189 = vmatprep.subr.mxu1 %v1409_v2 }
  0x2d   :  { %1156 = vmatprep.subr.mxu0 %v1409_v2  ;;  %1190 = vmatpush3.msra.mxu1 %v1486_v11 }
  0x2e   :  { %1157 = vmatpush3.msra.mxu0 %v1496_v13  ;;  %1191 = vmatprep.subr.mxu1 %v1409_v2 }
  0x2f   :  { %1158 = vmatprep.subr.mxu0 %v1409_v2  ;;  %1192 = vmatpush3.msra.mxu1 %v1496_v13 }
  0x30   :  { %1159 = vmatpush3.msra.mxu0 %v1506_v15  ;;  %1193 = vmatprep.subr.mxu1 %v1409_v2 }
  0x31   :  { %1160 = vmatprep.subr.mxu0 %v1409_v2  ;;  %1194 = vmatpush3.msra.mxu1 %v1506_v15 }
  0x32   :  { %1161 = vmatpush3.msra.mxu0 %v1516_v17  ;;  %1195 = vmatprep.subr.mxu1 %v1409_v2 }
  0x33   :  { %1162 = vmatprep.subr.mxu0 %v1409_v2  ;;  %1196 = vmatpush3.msra.mxu1 %v1516_v17 }
  0x34   :  { %1163 = vmatpush3.msra.mxu0 %v1526_v19  ;;  %1197 = vmatprep.subr.mxu1 %v1409_v2 }
  0x35   :  { %1164 = vmatprep.subr.mxu0 %v1409_v2  ;;  %1198 = vmatpush3.msra.mxu1 %v1526_v19 }
  0x36   :  { %1165 = vmatpush3.msra.mxu0 %v1536_v21  ;;  %1199 = vmatprep.subr.mxu1 %v1409_v2 }
  0x37   :  { %1166 = vmatprep.subr.mxu0 %v1409_v2  ;;  %1200 = vmatpush3.msra.mxu1 %v1536_v21 }
  0x38   :  { %1167 = vmatpush3.msra.mxu0 %v1550_v24  ;;  %1201 = vmatprep.subr.mxu1 %v1409_v2 }
  0x39   :  { %1168 = vmatprep.subr.mxu0 %v1409_v2  ;;  %1202 = vmatpush3.msra.mxu1 %v1550_v24 }
  0x3a   :  { %1169 = vmatpush3.msra.mxu0 %v1559_v26  ;;  %1203 = vmatprep.subr.mxu1 %v1409_v2 }
  0x3b   :  { %1170 = vmatprep.subr.mxu0 %v1409_v2  ;;  %1204 = vmatpush3.msra.mxu1 %v1559_v26 }
  0x3c   :  { %1171 = vmatpush3.msra.mxu0 %v1569_v28  ;;  %1205 = vmatprep.subr.mxu1 %v1409_v2 }
  0x3d   :  { %1172 = vmatprep.subr.mxu0 %v1409_v2  ;;  %1206 = vmatpush3.msra.mxu1 %v1569_v28 }
  0x3e   :  { %1173 = vmatpush3.msra.mxu0 %v1579_v30  ;;  %1207 = vmatprep.subr.mxu1 %v1409_v2 }
  0x3f   :  { %1174 = vmatprep.subr.mxu0 %v1409_v2  ;;  %1208 = vmatpush3.msra.mxu1 %v1579_v30 }
  0x40   :  { %1175 = vmatpush3.msra.mxu0 %v1589_v32  ;;  %1209 = vmatprep.subr.mxu1 %v1409_v2 }
  0x41   :  { %1176 = vmatprep.subr.mxu0 %v1409_v2  ;;  %1210 = vmatpush3.msra.mxu1 %v1589_v32 }
  0x42   :  { %1177 = vmatpush3.msra.mxu0 %v1599_v34  ;;  %1211 = vmatprep.subr.mxu1 %v1409_v2 }
  0x43   :  { %1213 = vmatprep.mubr.msk.f32.mxu1 %vm1410_vm0, %v1409_v2  ;;  %1212 = vmatpush3.msra.mxu1 %v1599_v34 }
  0x44   :  { %1216 = vmatprep.subr.mxu0 %v1409_v2  ;;  %1251 = vmatprep.subr.mxu1 %v1409_v2 }
  0x45   :  { %1102 = vmatprep.mubr.f32.mxu0 %v19_v35 }
  0x46   :  { %1103 = vmatmul.mubr.f32.gmra.mxu0 %v20_v36 }
  0x47   :  { %1105 = vmatprep.mubr.f32.mxu0 %v21_v37 }
  0x4a   :  { %1106 = vmatmul.mubr.f32.gmra.mxu0 %v22_v38 }
  0x4b   :  { %1108 = vmatprep.mubr.f32.mxu0 %v23_v39 }
  0x4e   :  { %1109 = vmatmul.mubr.f32.gmra.mxu0 %v24_v40 }
  0x4f   :  { %1178 = vmatprep.mubr.msk.f32.mxu0 %vm1410_vm0, %v1409_v2 }
  0xe2   :  { %v1101_v41 = vpop.f32.mrf.mxu0 }
  0xe3   :  { %v243_v44 = vpop.f32.mrf.mxu1  ;;  %v120_v55 = vadd.f32 %v1101_v41, %v1696_v42 }
  0xe4   :  { %v114_v43 = vpop.f32.mrf.mxu0 }
  0xe5   :  { %v115_v45 = vadd.f32 %v1696_v42, %v114_v43  ;;  %v1145_v46 = vpop.f32.mrf.mxu1 }
  0xe7   :  { %v248_v47 = vadd.f32 %v243_v44, %v115_v45 }
  0xe9   :  { %1393 = vtanh.f32 %v248_v47 }
  0xf6   :  { %v1394_v48 = vpop.eup %1393 }
  0xf7   :  { %250 = vst [vmem:[%s1917_s4] sm:$0xff] %v1394_v48  ;;  %1179 = vmatmul.mubr.f32.vlgmr.msra.gmra.mxu0 %v1394_v48 }
  0xf8   :  { %1217 = vmatpush3.msra.mxu0 %v1451_v4  ;;  %1248 = vmatprep.mubr.msk.f32.mxu0 %vm1410_vm0, %v1409_v2 }
  0xf9   :  { %1218 = vmatprep.subr.mxu0 %v1409_v2 }
  0xfa   :  { %1219 = vmatpush3.msra.mxu0 %v1456_v5 }
  0xfb   :  { %1220 = vmatprep.subr.mxu0 %v1409_v2 }
  0xfc   :  { %1221 = vmatpush3.msra.mxu0 %v1466_v7 }
  0xfd   :  { %1222 = vmatprep.subr.mxu0 %v1409_v2 }
  0xfe   :  { %1223 = vmatpush3.msra.mxu0 %v1476_v9 }
  0xff   :  { %1224 = vmatprep.subr.mxu0 %v1409_v2 }
 0x100   :  { %1225 = vmatpush3.msra.mxu0 %v1486_v11 }
 0x101   :  { %1226 = vmatprep.subr.mxu0 %v1409_v2 }
 0x102   :  { %1227 = vmatpush3.msra.mxu0 %v1496_v13 }
 0x103   :  { %1228 = vmatprep.subr.mxu0 %v1409_v2 }
 0x104   :  { %1229 = vmatpush3.msra.mxu0 %v1506_v15 }
 0x105   :  { %1230 = vmatprep.subr.mxu0 %v1409_v2 }
 0x106   :  { %1231 = vmatpush3.msra.mxu0 %v1516_v17  ;;  %v1736_v49 = vpop.f32.mrf.mxu0 }
 0x107   :  { %1232 = vmatprep.subr.mxu0 %v1409_v2  ;;  %v130_v1 = vadd.f32 %v1736_v49, %v1696_v42 }
 0x108   :  { %1233 = vmatpush3.msra.mxu0 %v1526_v19  ;;  %v124_v50 = vpop.f32.mrf.mxu0 }
 0x109   :  { %1234 = vmatprep.subr.mxu0 %v1409_v2  ;;  %v125_v60 = vadd.f32 %v1696_v42, %v124_v50 }
 0x10a   :  { %1235 = vmatpush3.msra.mxu0 %v1536_v21  ;;  %v1738_v51 = vpop.f32.mrf.mxu0 }
 0x10b   :  { %1236 = vmatprep.subr.mxu0 %v1409_v2 }
 0x10c   :  { %1237 = vmatpush3.msra.mxu0 %v1550_v24  ;;  %v1740_v52 = vpop.f32.mrf.mxu0 }
 0x10d   :  { %1238 = vmatprep.subr.mxu0 %v1409_v2  ;;  %v135_v12 = vadd.f32 %v1696_v42, %v1740_v52 }
 0x10e   :  { %1239 = vmatpush3.msra.mxu0 %v1559_v26  ;;  %v1742_v53 = vpop.f32.mrf.mxu0 }
 0x10f   :  { %1240 = vmatprep.subr.mxu0 %v1409_v2 }
 0x110   :  { %1241 = vmatpush3.msra.mxu0 %v1569_v28  ;;  %v1744_v54 = vpop.f32.mrf.mxu0 }
 0x111   :  { %1242 = vmatprep.subr.mxu0 %v1409_v2 }
 0x112   :  { %1243 = vmatpush3.msra.mxu0 %v1579_v30 }
 0x113   :  { %1244 = vmatprep.subr.mxu0 %v1409_v2 }
 0x114   :  { %1245 = vmatpush3.msra.mxu0 %v1589_v32 }
 0x115   :  { %1246 = vmatprep.subr.mxu0 %v1409_v2 }
 0x116   :  { %1247 = vmatpush3.msra.mxu0 %v1599_v34 }
 0x117   :  { %1286 = vmatprep.subr.mxu0 %v1409_v2 }
 0x1b7   :  { %v333_v56 = vpop.f32.mrf.mxu0 }
 0x1b8   :  { %v339_v57 = vadd.f32 %v333_v56, %v120_v55 }
 0x1b9   :  { %v1180_v58 = vpop.f32.mrf.mxu0 }
 0x1ba   :  { %1395 = vtanh.f32 %v339_v57 }
 0x1c7   :  { %v1396_v59 = vpop.eup %1395 }
 0x1c8   :  { %894 = vst [vmem:[%s1917_s4 + $0x8] sm:$0xff] %v1396_v59  ;;  %1214 = vmatmul.mubr.f32.vlgmr.msra.gmra.mxu1 %v1396_v59 }
 0x1c9   :  { %1252 = vmatpush3.msra.mxu1 %v1451_v4  ;;  %1283 = vmatprep.mubr.msk.f32.mxu1 %vm1410_vm0, %v1409_v2 }
 0x1ca   :  { %1253 = vmatprep.subr.mxu1 %v1409_v2 }
 0x1cb   :  { %1254 = vmatpush3.msra.mxu1 %v1456_v5 }
 0x1cc   :  { %1255 = vmatprep.subr.mxu1 %v1409_v2 }
 0x1cd   :  { %1256 = vmatpush3.msra.mxu1 %v1466_v7 }
 0x1ce   :  { %1257 = vmatprep.subr.mxu1 %v1409_v2 }
 0x1cf   :  { %1258 = vmatpush3.msra.mxu1 %v1476_v9 }
 0x1d0   :  { %1259 = vmatprep.subr.mxu1 %v1409_v2 }
 0x1d1   :  { %1260 = vmatpush3.msra.mxu1 %v1486_v11 }
 0x1d2   :  { %1261 = vmatprep.subr.mxu1 %v1409_v2 }
 0x1d3   :  { %1262 = vmatpush3.msra.mxu1 %v1496_v13 }
 0x1d4   :  { %1263 = vmatprep.subr.mxu1 %v1409_v2 }
 0x1d5   :  { %1264 = vmatpush3.msra.mxu1 %v1506_v15 }
 0x1d6   :  { %1265 = vmatprep.subr.mxu1 %v1409_v2 }
 0x1d7   :  { %1266 = vmatpush3.msra.mxu1 %v1516_v17 }
 0x1d8   :  { %1267 = vmatprep.subr.mxu1 %v1409_v2 }
 0x1d9   :  { %1268 = vmatpush3.msra.mxu1 %v1526_v19 }
 0x1da   :  { %1269 = vmatprep.subr.mxu1 %v1409_v2 }
 0x1db   :  { %1270 = vmatpush3.msra.mxu1 %v1536_v21 }
 0x1dc   :  { %1271 = vmatprep.subr.mxu1 %v1409_v2 }
 0x1dd   :  { %1272 = vmatpush3.msra.mxu1 %v1550_v24 }
 0x1de   :  { %1273 = vmatprep.subr.mxu1 %v1409_v2 }
 0x1df   :  { %1274 = vmatpush3.msra.mxu1 %v1559_v26 }
 0x1e0   :  { %1275 = vmatprep.subr.mxu1 %v1409_v2 }
 0x1e1   :  { %1276 = vmatpush3.msra.mxu1 %v1569_v28 }
 0x1e2   :  { %1277 = vmatprep.subr.mxu1 %v1409_v2 }
 0x1e3   :  { %1278 = vmatpush3.msra.mxu1 %v1579_v30 }
 0x1e4   :  { %1279 = vmatprep.subr.mxu1 %v1409_v2 }
 0x1e5   :  { %1280 = vmatpush3.msra.mxu1 %v1589_v32 }
 0x1e6   :  { %1281 = vmatprep.subr.mxu1 %v1409_v2 }
 0x1e7   :  { %1282 = vmatpush3.msra.mxu1 %v1599_v34 }
 0x1e8   :  { %1321 = vmatprep.subr.mxu1 %v1409_v2 }
 0x288   :  { %v424_v61 = vpop.f32.mrf.mxu1 }
 0x289   :  { %v430_v62 = vadd.f32 %v424_v61, %v125_v60 }
 0x28a   :  { %v1215_v63 = vpop.f32.mrf.mxu1 }
 0x28b   :  { %1397 = vtanh.f32 %v430_v62 }
 0x298   :  { %v1398_v0 = vpop.eup %1397 }
 0x299   :  { %896 = vst [vmem:[%s1917_s4 + $0x10] sm:$0xff] %v1398_v0  ;;  %1249 = vmatmul.mubr.f32.vlgmr.msra.gmra.mxu0 %v1398_v0 }
 0x29a   :  { %1287 = vmatpush3.msra.mxu0 %v1451_v4  ;;  %1318 = vmatprep.mubr.msk.f32.mxu0 %vm1410_vm0, %v1409_v2 }
 0x29b   :  { %1288 = vmatprep.subr.mxu0 %v1409_v2 }
 0x29c   :  { %1289 = vmatpush3.msra.mxu0 %v1456_v5 }
 0x29d   :  { %1290 = vmatprep.subr.mxu0 %v1409_v2 }
 0x29e   :  { %1291 = vmatpush3.msra.mxu0 %v1466_v7 }
 0x29f   :  { %1292 = vmatprep.subr.mxu0 %v1409_v2 }
 0x2a0   :  { %1293 = vmatpush3.msra.mxu0 %v1476_v9 }
 0x2a1   :  { %1294 = vmatprep.subr.mxu0 %v1409_v2 }
 0x2a2   :  { %1295 = vmatpush3.msra.mxu0 %v1486_v11 }
 0x2a3   :  { %1296 = vmatprep.subr.mxu0 %v1409_v2 }
 0x2a4   :  { %1297 = vmatpush3.msra.mxu0 %v1496_v13 }
 0x2a5   :  { %1298 = vmatprep.subr.mxu0 %v1409_v2 }
 0x2a6   :  { %1299 = vmatpush3.msra.mxu0 %v1506_v15 }
 0x2a7   :  { %1300 = vmatprep.subr.mxu0 %v1409_v2 }
 0x2a8   :  { %1301 = vmatpush3.msra.mxu0 %v1516_v17 }
 0x2a9   :  { %1302 = vmatprep.subr.mxu0 %v1409_v2 }
 0x2aa   :  { %1303 = vmatpush3.msra.mxu0 %v1526_v19 }
 0x2ab   :  { %1304 = vmatprep.subr.mxu0 %v1409_v2 }
 0x2ac   :  { %1305 = vmatpush3.msra.mxu0 %v1536_v21 }
 0x2ad   :  { %1306 = vmatprep.subr.mxu0 %v1409_v2 }
 0x2ae   :  { %1307 = vmatpush3.msra.mxu0 %v1550_v24 }
 0x2af   :  { %1308 = vmatprep.subr.mxu0 %v1409_v2 }
 0x2b0   :  { %1309 = vmatpush3.msra.mxu0 %v1559_v26 }
 0x2b1   :  { %1310 = vmatprep.subr.mxu0 %v1409_v2 }
 0x2b2   :  { %1311 = vmatpush3.msra.mxu0 %v1569_v28 }
 0x2b3   :  { %1312 = vmatprep.subr.mxu0 %v1409_v2 }
 0x2b4   :  { %1313 = vmatpush3.msra.mxu0 %v1579_v30 }
 0x2b5   :  { %1314 = vmatprep.subr.mxu0 %v1409_v2 }
 0x2b6   :  { %1315 = vmatpush3.msra.mxu0 %v1589_v32 }
 0x2b7   :  { %1316 = vmatprep.subr.mxu0 %v1409_v2 }
 0x2b8   :  { %1317 = vmatpush3.msra.mxu0 %v1599_v34 }
 0x2b9   :  { %1356 = vmatprep.subr.mxu0 %v1409_v2 }
 0x359   :  { %v515_v3 = vpop.f32.mrf.mxu0 }
 0x35a   :  { %v521_v6 = vadd.f32 %v515_v3, %v130_v1 }
 0x35b   :  { %v1250_v8 = vpop.f32.mrf.mxu0 }
 0x35c   :  { %1399 = vtanh.f32 %v521_v6 }
 0x369   :  { %v1400_v10 = vpop.eup %1399 }
 0x36a   :  { %898 = vst [vmem:[%s1917_s4 + $0x18] sm:$0xff] %v1400_v10  ;;  %1284 = vmatmul.mubr.f32.vlgmr.msra.gmra.mxu1 %v1400_v10 }
 0x36b   :  { %1322 = vmatpush3.msra.mxu1 %v1451_v4  ;;  %1353 = vmatprep.mubr.msk.f32.mxu1 %vm1410_vm0, %v1409_v2 }
 0x36c   :  { %1323 = vmatprep.subr.mxu1 %v1409_v2 }
 0x36d   :  { %1324 = vmatpush3.msra.mxu1 %v1456_v5 }
 0x36e   :  { %1325 = vmatprep.subr.mxu1 %v1409_v2 }
 0x36f   :  { %1326 = vmatpush3.msra.mxu1 %v1466_v7 }
 0x370   :  { %1327 = vmatprep.subr.mxu1 %v1409_v2 }
 0x371   :  { %1328 = vmatpush3.msra.mxu1 %v1476_v9 }
 0x372   :  { %1329 = vmatprep.subr.mxu1 %v1409_v2 }
 0x373   :  { %1330 = vmatpush3.msra.mxu1 %v1486_v11 }
 0x374   :  { %1331 = vmatprep.subr.mxu1 %v1409_v2 }
 0x375   :  { %1332 = vmatpush3.msra.mxu1 %v1496_v13 }
 0x376   :  { %1333 = vmatprep.subr.mxu1 %v1409_v2 }
 0x377   :  { %1334 = vmatpush3.msra.mxu1 %v1506_v15 }
 0x378   :  { %1335 = vmatprep.subr.mxu1 %v1409_v2 }
 0x379   :  { %1336 = vmatpush3.msra.mxu1 %v1516_v17 }
 0x37a   :  { %1337 = vmatprep.subr.mxu1 %v1409_v2 }
 0x37b   :  { %1338 = vmatpush3.msra.mxu1 %v1526_v19 }
 0x37c   :  { %1339 = vmatprep.subr.mxu1 %v1409_v2 }
 0x37d   :  { %1340 = vmatpush3.msra.mxu1 %v1536_v21 }
 0x37e   :  { %1341 = vmatprep.subr.mxu1 %v1409_v2 }
 0x37f   :  { %1342 = vmatpush3.msra.mxu1 %v1550_v24 }
 0x380   :  { %1343 = vmatprep.subr.mxu1 %v1409_v2 }
 0x381   :  { %1344 = vmatpush3.msra.mxu1 %v1559_v26 }
 0x382   :  { %1345 = vmatprep.subr.mxu1 %v1409_v2 }
 0x383   :  { %1346 = vmatpush3.msra.mxu1 %v1569_v28 }
 0x384   :  { %1347 = vmatprep.subr.mxu1 %v1409_v2 }
 0x385   :  { %1348 = vmatpush3.msra.mxu1 %v1579_v30 }
 0x386   :  { %1349 = vmatprep.subr.mxu1 %v1409_v2 }
 0x387   :  { %1350 = vmatpush3.msra.mxu1 %v1589_v32 }
 0x388   :  { %1351 = vmatprep.subr.mxu1 %v1409_v2 }
 0x389   :  { %1352 = vmatpush3.msra.mxu1 %v1599_v34 }
 0x42a   :  { %v606_v14 = vpop.f32.mrf.mxu1 }
 0x42b   :  { %v612_v16 = vadd.f32 %v606_v14, %v135_v12 }
 0x42c   :  { %v1285_v18 = vpop.f32.mrf.mxu1 }
 0x42d   :  { %1401 = vtanh.f32 %v612_v16 }
 0x43a   :  { %v1402_v20 = vpop.eup %1401 }
 0x43b   :  { %900 = vst [vmem:[%s1917_s4 + $0x20] sm:$0xff] %v1402_v20  ;;  %1319 = vmatmul.mubr.f32.vlgmr.msra.gmra.mxu0 %v1402_v20 }
 0x43c   :  { %1357 = vmatpush3.msra.mxu0 %v1451_v4  ;;  %1388 = vmatprep.mubr.msk.f32.mxu0 %vm1410_vm0, %v1409_v2  ;;  %v140_v4 = vadd.f32 %v1738_v51, %v1696_v42 }
 0x43d   :  { %1358 = vmatprep.subr.mxu0 %v1409_v2 }
 0x43e   :  { %1359 = vmatpush3.msra.mxu0 %v1456_v5 }
 0x43f   :  { %1360 = vmatprep.subr.mxu0 %v1409_v2 }
 0x440   :  { %1361 = vmatpush3.msra.mxu0 %v1466_v7 }
 0x441   :  { %1362 = vmatprep.subr.mxu0 %v1409_v2 }
 0x442   :  { %1363 = vmatpush3.msra.mxu0 %v1476_v9 }
 0x443   :  { %1364 = vmatprep.subr.mxu0 %v1409_v2 }
 0x444   :  { %1365 = vmatpush3.msra.mxu0 %v1486_v11 }
 0x445   :  { %1366 = vmatprep.subr.mxu0 %v1409_v2 }
 0x446   :  { %1367 = vmatpush3.msra.mxu0 %v1496_v13  ;;  %v145_v13 = vadd.f32 %v1696_v42, %v1744_v54 }
 0x447   :  { %1368 = vmatprep.subr.mxu0 %v1409_v2 }
 0x448   :  { %1369 = vmatpush3.msra.mxu0 %v1506_v15 }
 0x449   :  { %1370 = vmatprep.subr.mxu0 %v1409_v2 }
 0x44a   :  { %1371 = vmatpush3.msra.mxu0 %v1516_v17 }
 0x44b   :  { %1372 = vmatprep.subr.mxu0 %v1409_v2 }
 0x44c   :  { %1373 = vmatpush3.msra.mxu0 %v1526_v19 }
 0x44d   :  { %1374 = vmatprep.subr.mxu0 %v1409_v2 }
 0x44e   :  { %1375 = vmatpush3.msra.mxu0 %v1536_v21  ;;  %v150_v21 = vadd.f32 %v1742_v53, %v1696_v42 }
 0x44f   :  { %1376 = vmatprep.subr.mxu0 %v1409_v2 }
 0x450   :  { %1377 = vmatpush3.msra.mxu0 %v1550_v24 }
 0x451   :  { %1378 = vmatprep.subr.mxu0 %v1409_v2 }
 0x452   :  { %1379 = vmatpush3.msra.mxu0 %v1559_v26 }
 0x453   :  { %1380 = vmatprep.subr.mxu0 %v1409_v2 }
 0x454   :  { %1381 = vmatpush3.msra.mxu0 %v1569_v28 }
 0x455   :  { %1382 = vmatprep.subr.mxu0 %v1409_v2 }
 0x456   :  { %1383 = vmatpush3.msra.mxu0 %v1579_v30 }
 0x457   :  { %1384 = vmatprep.subr.mxu0 %v1409_v2 }
 0x458   :  { %1385 = vmatpush3.msra.mxu0 %v1589_v32 }
 0x459   :  { %1386 = vmatprep.subr.mxu0 %v1409_v2 }
 0x45a   :  { %1387 = vmatpush3.msra.mxu0 %v1599_v34 }
 0x4fb   :  { %v697_v5 = vpop.f32.mrf.mxu0 }
 0x4fc   :  { %v703_v7 = vadd.f32 %v697_v5, %v140_v4 }
 0x4fd   :  { %v1320_v9 = vpop.f32.mrf.mxu0 }
 0x4fe   :  { %1403 = vtanh.f32 %v703_v7 }
 0x50b   :  { %v1404_v11 = vpop.eup %1403 }
 0x50c   :  { %902 = vst [vmem:[%s1917_s4 + $0x28] sm:$0xff] %v1404_v11  ;;  %1354 = vmatmul.mubr.f32.vlgmr.msra.gmra.mxu1 %v1404_v11 }
 0x5cc   :  { %v788_v15 = vpop.f32.mrf.mxu1 }
 0x5cd   :  { %v794_v2 = vadd.f32 %v788_v15, %v145_v13 }
 0x5ce   :  { %v1355_v17 = vpop.f32.mrf.mxu1 }
 0x5cf   :  { %1405 = vtanh.f32 %v794_v2 }
 0x5dc   :  { %v1406_v19 = vpop.eup %1405 }
 0x5dd   :  { %904 = vst [vmem:[%s1917_s4 + $0x30] sm:$0xff] %v1406_v19  ;;  %1389 = vmatmul.mubr.f32.vlgmr.msra.gmra.mxu0 %v1406_v19 }
 0x69d   :  { %v879_v22 = vpop.f32.mrf.mxu0 }
 0x69e   :  { %v885_v23 = vadd.f32 %v879_v22, %v150_v21 }
 0x69f   :  { %v1390_v24 = vpop.f32.mrf.mxu0 }
 0x6a0   :  { %1407 = vtanh.f32 %v885_v23 }
 0x6ad   :  { %v1408_v25 = vpop.eup %1407 }
 0x6ae   :  { %906 = vst [vmem:[%s1917_s4 + $0x38] sm:$0xff] %v1408_v25 }

</bundles_post_ra>
